<compile_context>
chip_gen: v7x
topology: tpu7x:2x2x1
jax: 0.10.0
libtpu: 0.0.40
codegen_flags: <defaults>
</compile_context>

<pallas_src>
import jax
import jax.numpy as jnp
from jax.experimental import pallas as pl
from jax.experimental.pallas import tpu as pltpu


_STAGE1_ROW_TILE = 1024          # multiple of 8; fits comfortably in VMEM on v5e/v6e/v7x
_VMEM_LIMIT = 48 * 1024 * 1024   # explicit scoped-VMEM cap (< 64 MiB physical on v7x)


def _round_up(x, m):
    return ((x + m - 1) // m) * m


# ---------------- Pallas kernels (hot path) ----------------

def _stage1_kernel(p_ref, w_ref, shift_ref, o_ref):
    """o = relu(patches @ w_bn_scaled + bn_shift), stored in bf16."""
    y = jnp.dot(p_ref[...], w_ref[...], preferred_element_type=jnp.float32)
    y = jnp.maximum(y + shift_ref[...], 0.0)
    o_ref[...] = y.astype(o_ref.dtype)


def _make_stage2_kernel(wp, lv):
    """Fused 3x3 conv (64->3) + bias + LeakyReLU(0.2) over one zero-padded image.

    y_ref: (1, 64, Hp*Wp) bf16, channels-first, spatially flattened, padded by 1 pixel.
    w_ref: (27, 64) bf16, row index = (di*3 + dj)*3 + out_channel.
    One matmul produces the per-tap/per-channel partial products; the conv sum is the
    accumulation of 9 statically shifted slices (skewed implicit im2col). The two junk
    "skew" columns per output row are dropped in the wrapper.
    """
    def kernel(y_ref, w_ref, b_ref, o_ref):
        yp = jnp.dot(w_ref[...], y_ref[0],
                     preferred_element_type=jnp.float32)        # (27, Hp*Wp) f32
        acc = yp[0:3, 0:lv]                                      # tap (di=0, dj=0)
        for t in range(1, 9):
            di, dj = divmod(t, 3)
            s = di * wp + dj
            acc = acc + yp[3 * t:3 * t + 3, s:s + lv]
        acc = acc + b_ref[...]                                   # (3,1) broadcast over lanes
        o_ref[0] = jnp.where(acc > 0, acc, 0.2 * acc)            # LeakyReLU(0.2), lane-dense
    return kernel


# ---------------- JAX glue ----------------

def _im2col(x_nhwc, ksize, stride, pad):
    """Patch matrix with (kh, kw, C) flattening order (matches the (2,3,1,0) weight reshape)."""
    N, H, W, C = x_nhwc.shape
    xp = jnp.pad(x_nhwc, ((0, 0), (pad, pad), (pad, pad), (0, 0)))
    Ho = (H + 2 * pad - ksize) // stride + 1
    Wo = (W + 2 * pad - ksize) // stride + 1
    cols = []
    for i in range(ksize):
        for j in range(ksize):
            cols.append(xp[:, i:i + stride * Ho:stride, j:j + stride * Wo:stride, :])
    patches = jnp.stack(cols, axis=3)                            # (N, Ho, Wo, k*k, C)
    return patches.reshape(N * Ho * Wo, ksize * ksize * C), Ho, Wo


def encoder_forward(x_nchw, params):
    """Forward pass. x_nchw: (N, 3, H, W) float32 -> (N, 3, H//2, W//2) float32."""
    N, _, H, W = x_nchw.shape
    x = jnp.transpose(x_nchw, (0, 2, 3, 1)).astype(jnp.bfloat16)       # NHWC, bf16

    # ---- stage 1: Conv2d(3->64, k7, s2, p3, bias=False) + BatchNorm2d(64) + ReLU ----
    # TODO(synk): PyTorch module defaults to train() (BN uses batch statistics); BN here is
    # implemented in eval/inference mode with running_mean/var.
    p1, H1, W1 = _im2col(x, ksize=7, stride=2, pad=3)                  # (R1, 147) bf16
    R1, K1 = p1.shape
    Kp = _round_up(K1, 8)                                              # 147 -> 152
    tile_r = min(_STAGE1_ROW_TILE, _round_up(R1, 8))
    R1p = _round_up(R1, tile_r)
    p1 = jnp.pad(p1, ((0, R1p - R1), (0, Kp - K1)))

    eps = 1e-5
    scale = params["bn_gamma"] / jnp.sqrt(params["bn_var"] + eps)      # (64,)
    shift = (params["bn_beta"] - params["bn_mean"] * scale).reshape(1, 64).astype(jnp.float32)
    w1 = jnp.transpose(params["conv1_w"], (2, 3, 1, 0)).reshape(K1, 64)
    w1 = jnp.pad(w1 * scale[None, :], ((0, Kp - K1), (0, 0))).astype(jnp.bfloat16)

    y1_rows = pl.pallas_call(
        _stage1_kernel,
        out_shape=jax.ShapeDtypeStruct((R1p, 64), jnp.bfloat16),
        grid=(R1p // tile_r,),
        in_specs=[
            pl.BlockSpec((tile_r, Kp), lambda i: (i, 0)),              # patch row tiles
            pl.BlockSpec((Kp, 64), lambda i: (0, 0)),                  # resident scaled weight
            pl.BlockSpec((1, 64), lambda i: (0, 0)),                   # resident BN shift
        ],
        out_specs=pl.BlockSpec((tile_r, 64), lambda i: (i, 0)),
        compiler_params=pltpu.CompilerParams(
            dimension_semantics=("parallel",),
            vmem_limit_bytes=_VMEM_LIMIT),
    )(p1, w1, shift)

    # ---- stage 2: Conv2d(64->3, k3, s1, p1, bias=True) + LeakyReLU(0.2), fused im2col ----
    y1 = y1_rows[:R1].reshape(N, H1, W1, 64)
    Hp, Wp = H1 + 2, W1 + 2
    y1p = jnp.pad(y1, ((0, 0), (1, 1), (1, 1), (0, 0)))                # conv padding = 1
    y1cf = jnp.transpose(y1p, (0, 3, 1, 2)).reshape(N, 64, Hp * Wp)    # channels-first, flat

    w2 = jnp.transpose(params["conv2_w"], (2, 3, 0, 1)).reshape(27, 64).astype(jnp.bfloat16)
    b2 = params["conv2_b"].reshape(3, 1).astype(jnp.float32)

    H2, W2 = H1, W1
    Lv = H2 * Wp - 2                                                   # skewed output length
    out = pl.pallas_call(
        _make_stage2_kernel(Wp, Lv),
        out_shape=jax.ShapeDtypeStruct((N, 3, Lv), jnp.float32),
        grid=(N,),
        in_specs=[
            pl.BlockSpec((1, 64, Hp * Wp), lambda n: (n, 0, 0)),       # one padded image/step
            pl.BlockSpec((27, 64), lambda n: (0, 0)),                  # resident taps x chans
            pl.BlockSpec((3, 1), lambda n: (0, 0)),                    # resident bias
        ],
        out_specs=pl.BlockSpec((1, 3, Lv), lambda n: (n, 0, 0)),
        compiler_params=pltpu.CompilerParams(
            dimension_semantics=("parallel",),
            vmem_limit_bytes=_VMEM_LIMIT),
    )(y1cf, w2, b2)

    # undo the skew: pad by 2, fold flat index q = h*Wp + w, keep the first W2 columns -> NCHW
    out = jnp.pad(out, ((0, 0), (0, 0), (0, H2 * Wp - Lv)))
    return out.reshape(N, 3, H2, Wp)[:, :, :, :W2]


def init_params(key):
    """Deterministic synthetic parameters (shapes per the module's __init__).
    TODO(synk): pretrained resnet50 (weights=True) checkpoint is not loaded in-script."""
    ks = jax.random.split(key, 6)
    return {
        "conv1_w": 0.05 * jax.random.normal(ks[0], (64, 3, 7, 7), jnp.float32),
        "bn_gamma": jnp.ones((64,), jnp.float32)
                    + 0.1 * jax.random.normal(ks[1], (64,), jnp.float32),
        "bn_beta": 0.1 * jax.random.normal(ks[2], (64,), jnp.float32),
        "bn_mean": 0.1 * jax.random.normal(ks[3], (64,), jnp.float32),
        "bn_var": jnp.abs(jax.random.normal(ks[4], (64,), jnp.float32)) + 0.5,
        "conv2_w": 0.05 * jax.random.normal(ks[5], (3, 64, 3, 3), jnp.float32),
        "conv2_b": jnp.linspace(-0.1, 0.1, 3).astype(jnp.float32),
    }


def _reference_forward(x_nchw, params):
    """Pure-JAX f32 reference (lax convolutions) for a numerical sanity check."""
    y = jax.lax.conv_general_dilated(
        x_nchw, params["conv1_w"], window_strides=(2, 2), padding=((3, 3), (3, 3)),
        dimension_numbers=("NCHW", "OIHW", "NCHW"))
    scale = params["bn_gamma"] / jnp.sqrt(params["bn_var"] + 1e-5)
    shift = params["bn_beta"] - params["bn_mean"] * scale
    y = jnp.maximum(y * scale[None, :, None, None] + shift[None, :, None, None], 0.0)
    y = jax.lax.conv_general_dilated(
        y, params["conv2_w"], window_strides=(1, 1), padding=((1, 1), (1, 1)),
        dimension_numbers=("NCHW", "OIHW", "NCHW"))
    y = y + params["conv2_b"][None, :, None, None]
    return jnp.where(y > 0, y, 0.2 * y)


if __name__ == "__main__":
    key = jax.random.PRNGKey(0)
    kx, kp = jax.random.split(key)
    # Small NCHW input consistent with the module (first conv expects 3 channels).
    x = jax.random.normal(kx, (2, 3, 16, 16), jnp.float32)
    params = init_params(kp)

    out = jax.jit(encoder_forward)(x, params)
    out = jax.block_until_ready(out)
    assert out.shape == (2, 3, 8, 8), out.shape
    assert out.dtype == jnp.float32

    # Loose-tolerance check vs a pure-JAX f32 reference (kernels compute in bf16).
    ref = _reference_forward(x, params)
    tol = 0.1 + 0.1 * jnp.abs(ref)
    assert bool(jnp.all(jnp.abs(out - ref) <= tol)), "mismatch vs reference"

    print("KERNEL_OK")
</pallas_src>

<mosaic_0001>
module attributes {stable_mosaic.version = 11 : i64} {
  func.func @_stage1_kernel(%arg0: i32, %arg1: memref<128x152xbf16, #tpu.memory_space<vmem>>, %arg2: memref<152x64xbf16, #tpu.memory_space<vmem>>, %arg3: memref<1x64xf32, #tpu.memory_space<vmem>>, %arg4: memref<128x64xbf16, #tpu.memory_space<vmem>>) attributes {dimension_semantics = [#tpu.dimension_semantics<parallel>], iteration_bounds = array<i64: 1>, scalar_prefetch = 0 : i64, scratch_operands = 0 : i64, tpu.core_type = #tpu.core_type<tc>, window_params = [{transform_indices = @transform_0, window_bounds = array<i64: 128, 152>}, {pipeline_mode = #tpu.pipeline_mode<synchronous>, transform_indices = @transform_1, window_bounds = array<i64: 152, 64>}, {pipeline_mode = #tpu.pipeline_mode<synchronous>, transform_indices = @transform_2, window_bounds = array<i64: 1, 64>}, {transform_indices = @transform_3, window_bounds = array<i64: 128, 64>}]} {
    %c0 = arith.constant 0 : index
    %c0_0 = arith.constant 0 : index
    %0 = vector.load %arg1[%c0, %c0_0] : memref<128x152xbf16, #tpu.memory_space<vmem>>, vector<128x152xbf16>
    %c0_1 = arith.constant 0 : index
    %c0_2 = arith.constant 0 : index
    %1 = vector.load %arg2[%c0_1, %c0_2] : memref<152x64xbf16, #tpu.memory_space<vmem>>, vector<152x64xbf16>
    %cst = arith.constant dense<0.000000e+00> : vector<128x64xf32>
    %2 = tpu.matmul %0, %1, %cst {dimension_numbers = #tpu.dot_dimension_numbers<[1], [0], [0], [1], [0, 0, 1, 1], [], []>} : vector<128x152xbf16>, vector<152x64xbf16>, vector<128x64xf32> -> vector<128x64xf32>
    %c0_3 = arith.constant 0 : index
    %c0_4 = arith.constant 0 : index
    %3 = vector.load %arg3[%c0_3, %c0_4] : memref<1x64xf32, #tpu.memory_space<vmem>>, vector<1x64xf32>
    %4 = vector.broadcast %3 : vector<1x64xf32> to vector<128x64xf32>
    %5 = arith.addf %2, %4 : vector<128x64xf32>
    %cst_5 = arith.constant 0.000000e+00 : f32
    %6 = vector.broadcast %cst_5 : f32 to vector<128x64xf32>
    %7 = arith.maximumf %5, %6 : vector<128x64xf32>
    %8 = arith.truncf %7 : vector<128x64xf32> to vector<128x64xbf16>
    %c0_6 = arith.constant 0 : index
    %c0_7 = arith.constant 0 : index
    %9 = vector.load %arg4[%c0_6, %c0_7] : memref<128x64xbf16, #tpu.memory_space<vmem>>, vector<128x64xbf16>
    tpu.vector_store %arg4[%c0_6, %c0_7], %8 {strides = array<i32>} : memref<128x64xbf16, #tpu.memory_space<vmem>>, vector<128x64xbf16>,
    return
  }
  func.func @transform_0(%arg0: i32) -> (i32, i32) {
    %c0_i32 = arith.constant 0 : i32
    %c0_i32_0 = arith.constant 0 : i32
    return %arg0, %c0_i32 : i32, i32
  }
  func.func @transform_1(%arg0: i32) -> (i32, i32) {
    %c0_i32 = arith.constant 0 : i32
    %c0_i32_0 = arith.constant 0 : i32
    %c0_i32_1 = arith.constant 0 : i32
    return %c0_i32, %c0_i32_0 : i32, i32
  }
  func.func @transform_2(%arg0: i32) -> (i32, i32) {
    %c0_i32 = arith.constant 0 : i32
    %c0_i32_0 = arith.constant 0 : i32
    %c0_i32_1 = arith.constant 0 : i32
    return %c0_i32, %c0_i32_0 : i32, i32
  }
  func.func @transform_3(%arg0: i32) -> (i32, i32) {
    %c0_i32 = arith.constant 0 : i32
    %c0_i32_0 = arith.constant 0 : i32
    return %arg0, %c0_i32 : i32, i32
  }
}

module attributes {stable_mosaic.version = 11 : i64} {
  func.func @kernel(%arg0: i32, %arg1: memref<1x64x100xbf16, #tpu.memory_space<vmem>>, %arg2: memref<27x64xbf16, #tpu.memory_space<vmem>>, %arg3: memref<3x1xf32, #tpu.memory_space<vmem>>, %arg4: memref<1x3x78xf32, #tpu.memory_space<vmem>>) attributes {dimension_semantics = [#tpu.dimension_semantics<parallel>], iteration_bounds = array<i64: 2>, scalar_prefetch = 0 : i64, scratch_operands = 0 : i64, tpu.core_type = #tpu.core_type<tc>, window_params = [{transform_indices = @transform_0, window_bounds = array<i64: 1, 64, 100>}, {pipeline_mode = #tpu.pipeline_mode<synchronous>, transform_indices = @transform_1, window_bounds = array<i64: 27, 64>}, {pipeline_mode = #tpu.pipeline_mode<synchronous>, transform_indices = @transform_2, window_bounds = array<i64: 3, 1>}, {transform_indices = @transform_3, window_bounds = array<i64: 1, 3, 78>}]} {
    %c0 = arith.constant 0 : index
    %c0_0 = arith.constant 0 : index
    %0 = vector.load %arg2[%c0, %c0_0] : memref<27x64xbf16, #tpu.memory_space<vmem>>, vector<27x64xbf16>
    %c0_1 = arith.constant 0 : index
    %c0_2 = arith.constant 0 : index
    %c0_3 = arith.constant 0 : index
    %1 = vector.load %arg1[%c0_1, %c0_2, %c0_3] : memref<1x64x100xbf16, #tpu.memory_space<vmem>>, vector<1x64x100xbf16>
    %2 = vector.shape_cast %1 : vector<1x64x100xbf16> to vector<64x100xbf16>
    %cst = arith.constant dense<0.000000e+00> : vector<27x100xf32>
    %3 = tpu.matmul %0, %2, %cst {dimension_numbers = #tpu.dot_dimension_numbers<[1], [0], [0], [1], [0, 0, 1, 1], [], []>} : vector<27x64xbf16>, vector<64x100xbf16>, vector<27x100xf32> -> vector<27x100xf32>
    %4 = vector.extract_strided_slice %3 {offsets = [0, 0], sizes = [3, 78], strides = [1, 1]} : vector<27x100xf32> to vector<3x78xf32>
    %5 = vector.extract_strided_slice %3 {offsets = [3, 1], sizes = [3, 78], strides = [1, 1]} : vector<27x100xf32> to vector<3x78xf32>
    %6 = arith.addf %4, %5 : vector<3x78xf32>
    %7 = vector.extract_strided_slice %3 {offsets = [6, 2], sizes = [3, 78], strides = [1, 1]} : vector<27x100xf32> to vector<3x78xf32>
    %8 = arith.addf %6, %7 : vector<3x78xf32>
    %9 = vector.extract_strided_slice %3 {offsets = [9, 10], sizes = [3, 78], strides = [1, 1]} : vector<27x100xf32> to vector<3x78xf32>
    %10 = arith.addf %8, %9 : vector<3x78xf32>
    %11 = vector.extract_strided_slice %3 {offsets = [12, 11], sizes = [3, 78], strides = [1, 1]} : vector<27x100xf32> to vector<3x78xf32>
    %12 = arith.addf %10, %11 : vector<3x78xf32>
    %13 = vector.extract_strided_slice %3 {offsets = [15, 12], sizes = [3, 78], strides = [1, 1]} : vector<27x100xf32> to vector<3x78xf32>
    %14 = arith.addf %12, %13 : vector<3x78xf32>
    %15 = vector.extract_strided_slice %3 {offsets = [18, 20], sizes = [3, 78], strides = [1, 1]} : vector<27x100xf32> to vector<3x78xf32>
    %16 = arith.addf %14, %15 : vector<3x78xf32>
    %17 = vector.extract_strided_slice %3 {offsets = [21, 21], sizes = [3, 78], strides = [1, 1]} : vector<27x100xf32> to vector<3x78xf32>
    %18 = arith.addf %16, %17 : vector<3x78xf32>
    %19 = vector.extract_strided_slice %3 {offsets = [24, 22], sizes = [3, 78], strides = [1, 1]} : vector<27x100xf32> to vector<3x78xf32>
    %20 = arith.addf %18, %19 : vector<3x78xf32>
    %c0_4 = arith.constant 0 : index
    %c0_5 = arith.constant 0 : index
    %21 = vector.load %arg3[%c0_4, %c0_5] : memref<3x1xf32, #tpu.memory_space<vmem>>, vector<3x1xf32>
    %22 = vector.broadcast %21 : vector<3x1xf32> to vector<3x78xf32>
    %23 = arith.addf %20, %22 : vector<3x78xf32>
    %cst_6 = arith.constant 0.000000e+00 : f32
    %24 = vector.broadcast %cst_6 : f32 to vector<3x78xf32>
    %25 = arith.cmpf ogt, %23, %24 : vector<3x78xf32>
    %cst_7 = arith.constant 2.000000e-01 : f32
    %26 = vector.broadcast %cst_7 : f32 to vector<3x78xf32>
    %27 = arith.mulf %26, %23 : vector<3x78xf32>
    %28 = arith.select %25, %23, %27 : vector<3x78xi1>, vector<3x78xf32>
    %c0_8 = arith.constant 0 : index
    %c0_9 = arith.constant 0 : index
    %c0_10 = arith.constant 0 : index
    %29 = vector.load %arg4[%c0_8, %c0_9, %c0_10] : memref<1x3x78xf32, #tpu.memory_space<vmem>>, vector<1x3x78xf32>
    %30 = vector.shape_cast %29 : vector<1x3x78xf32> to vector<3x78xf32>
    %31 = vector.shape_cast %28 : vector<3x78xf32> to vector<1x3x78xf32>
    tpu.vector_store %arg4[%c0_8, %c0_9, %c0_10], %31 {strides = array<i32>} : memref<1x3x78xf32, #tpu.memory_space<vmem>>, vector<1x3x78xf32>,
    return
  }
  func.func @transform_0(%arg0: i32) -> (i32, i32, i32) {
    %c0_i32 = arith.constant 0 : i32
    %c0_i32_0 = arith.constant 0 : i32
    %c0_i32_1 = arith.constant 0 : i32
    return %arg0, %c0_i32, %c0_i32_0 : i32, i32, i32
  }
  func.func @transform_1(%arg0: i32) -> (i32, i32) {
    %c0_i32 = arith.constant 0 : i32
    %c0_i32_0 = arith.constant 0 : i32
    %c0_i32_1 = arith.constant 0 : i32
    return %c0_i32, %c0_i32_0 : i32, i32
  }
  func.func @transform_2(%arg0: i32) -> (i32, i32) {
    %c0_i32 = arith.constant 0 : i32
    %c0_i32_0 = arith.constant 0 : i32
    %c0_i32_1 = arith.constant 0 : i32
    return %c0_i32, %c0_i32_0 : i32, i32
  }
  func.func @transform_3(%arg0: i32) -> (i32, i32, i32) {
    %c0_i32 = arith.constant 0 : i32
    %c0_i32_0 = arith.constant 0 : i32
    %c0_i32_1 = arith.constant 0 : i32
    return %arg0, %c0_i32, %c0_i32_0 : i32, i32, i32
  }
}

</mosaic_0001>

<bundles_post_ra>
// kernel: encoder_forward.2
= control target key start
LH: loop header
LB: loop body
LE: loop exit
PB: predicated region body
PF: predicated region fallthrough
CT: control target
= control target key end

     0   :  { %v535_v0 = vmov 0   ;;  %vm186_vm0 = vcmask 195584   ;;  %vm211_vm1 = vcmask 1043456   ;;  %vm392_vm2 = vcmask 519168   ;;  %s727_s1 = inlined_call_operand.vmem [shape: bf16[152,64], index: 1, kind: input, shape index: {}]   ;;  %s728_s0 = inlined_call_operand.vmem [shape: bf16[128,152], index: 0, kind: input, shape index: {}]   ;;  %s729_s2 = inlined_call_operand.vmem [shape: f32[1,64], index: 2, kind: input, shape index: {}]   ;;  %s730_s3 = inlined_call_operand.vmem [shape: bf16[128,64], index: 3, kind: output, shape index: {}]  }
   0x1   :  { %215 = vmatprep.subr.bf16.mxu0 %v535_v0  ;;  %480 = vmatprep.subr.bf16.mxu1 %v535_v0  ;;  %v501_v1 = vld [vmem:[%s727_s1] sm:$0xff]   ;;  %v502_v2 = vld [vmem:[%s727_s1 + $0x8] sm:$0xff]   ;;  %v503_v3 = vld [vmem:[%s727_s1 + $0x10] sm:$0xff]  }
   0x2   :  { %216 = vmatpush1.bf16.msra.mxu0 %v501_v1  ;;  %490 = vmatpush1.bf16.msra.mxu1 %v501_v1  ;;  %v504_v4 = vld [vmem:[%s727_s1 + $0x18] sm:$0xff]   ;;  %v513_v5 = vld [vmem:[%s728_s0 + $0x4] ss:$8 sps:$4 sm:$0xff]   ;;  %v507_v9 = vld [vmem:[%s727_s1 + $0x30] sm:$0xff]  }
   0x3   :  { %217 = vmatprep.subr.bf16.mxu0 %v535_v0  ;;  %481 = vmatprep.subr.bf16.mxu1 %v535_v0  ;;  %v516_v6 = vld [vmem:[%s728_s0 + $0x44] ss:$8 sps:$4 sm:$0xff]   ;;  %v508_v10 = vld [vmem:[%s727_s1 + $0x38] sm:$0xff]   ;;  %v510_v12 = vld [vmem:[%s727_s1 + $0x48] ss:$0 sps:$4 sm:$0xff]  }
   0x4   :  { %440 = vmatprep.mubr.msk.bf16.mxu0 %vm186_vm0, %v513_v5  ;;  %v505_v7 = vld [vmem:[%s727_s1 + $0x20] sm:$0xff]   ;;  %444 = vmatprep.mubr.msk.bf16.mxu1 %vm186_vm0, %v516_v6  ;;  %v506_v8 = vld [vmem:[%s727_s1 + $0x28] sm:$0xff]   ;;  %v213_v13 = vsel %vm211_vm1, %v510_v12, 0  ;;  %v517_v16 = vld [vmem:[%s728_s0 + $0x14] ss:$8 sps:$4 sm:$0xff]  }
   0x5   :  { %v509_v11 = vld [vmem:[%s727_s1 + $0x40] sm:$0xff]   ;;  %v519_v17 = vld [vmem:[%s728_s0 + $0x54] ss:$8 sps:$4 sm:$0xff]   ;;  %v521_v18 = vld [vmem:[%s728_s0 + $0x10] ss:$8 sps:$4 sm:$0xff]  }
   0x6   :  { %218 = vmatpush1.bf16.msra.mxu0 %v502_v2  ;;  %491 = vmatpush1.bf16.msra.mxu1 %v502_v2  ;;  %v511_v14 = vld [vmem:[%s728_s0] ss:$8 sps:$4 sm:$0xff]   ;;  %v522_v19 = vld [vmem:[%s728_s0 + $0x50] ss:$8 sps:$4 sm:$0xff]   ;;  %v523_v20 = vld [vmem:[%s728_s0 + $0x24] ss:$8 sps:$4 sm:$0xff]  }
   0x7   :  { %219 = vmatprep.subr.bf16.mxu0 %v535_v0  ;;  %482 = vmatprep.subr.bf16.mxu1 %v535_v0  ;;  %v514_v15 = vld [vmem:[%s728_s0 + $0x40] ss:$8 sps:$4 sm:$0xff]   ;;  %v525_v21 = vld [vmem:[%s728_s0 + $0x64] ss:$8 sps:$4 sm:$0xff]   ;;  %v529_v24 = vld [vmem:[%s728_s0 + $0x34] ss:$8 sps:$4 sm:$0xff]  }
   0x8   :  { %v527_v22 = vld [vmem:[%s728_s0 + $0x20] ss:$8 sps:$4 sm:$0xff]   ;;  %v531_v25 = vld [vmem:[%s728_s0 + $0x74] ss:$8 sps:$4 sm:$0xff]   ;;  %v533_v26 = vld [vmem:[%s728_s0 + $0x30] ss:$8 sps:$4 sm:$0xff]  }
   0x9   :  { %v528_v23 = vld [vmem:[%s728_s0 + $0x60] ss:$8 sps:$4 sm:$0xff]   ;;  %v534_v27 = vld [vmem:[%s728_s0 + $0x70] ss:$8 sps:$4 sm:$0xff]  }
   0xa   :  { %220 = vmatpush1.bf16.msra.mxu0 %v503_v3  ;;  %492 = vmatpush1.bf16.msra.mxu1 %v503_v3  ;;  %v645_v28 = vld [vmem:[%s729_s2] ss:$0 sm:$0xff] }
   0xb   :  { %221 = vmatprep.subr.bf16.mxu0 %v535_v0  ;;  %483 = vmatprep.subr.bf16.mxu1 %v535_v0 }
   0xe   :  { %222 = vmatpush1.bf16.msra.mxu0 %v504_v4  ;;  %493 = vmatpush1.bf16.msra.mxu1 %v504_v4 }
   0xf   :  { %223 = vmatprep.subr.bf16.mxu0 %v535_v0  ;;  %484 = vmatprep.subr.bf16.mxu1 %v535_v0 }
  0x12   :  { %224 = vmatpush1.bf16.msra.mxu0 %v505_v7  ;;  %494 = vmatpush1.bf16.msra.mxu1 %v505_v7 }
  0x13   :  { %225 = vmatprep.subr.bf16.mxu0 %v535_v0  ;;  %485 = vmatprep.subr.bf16.mxu1 %v535_v0 }
  0x16   :  { %226 = vmatpush1.bf16.msra.mxu0 %v506_v8  ;;  %495 = vmatpush1.bf16.msra.mxu1 %v506_v8 }
  0x17   :  { %227 = vmatprep.subr.bf16.mxu0 %v535_v0  ;;  %486 = vmatprep.subr.bf16.mxu1 %v535_v0 }
  0x1a   :  { %228 = vmatpush1.bf16.msra.mxu0 %v507_v9  ;;  %496 = vmatpush1.bf16.msra.mxu1 %v507_v9 }
  0x1b   :  { %229 = vmatprep.subr.bf16.mxu0 %v535_v0  ;;  %487 = vmatprep.subr.bf16.mxu1 %v535_v0 }
  0x1e   :  { %230 = vmatpush1.bf16.msra.mxu0 %v508_v10  ;;  %497 = vmatpush1.bf16.msra.mxu1 %v508_v10 }
  0x1f   :  { %231 = vmatprep.subr.bf16.mxu0 %v535_v0  ;;  %488 = vmatprep.subr.bf16.mxu1 %v535_v0 }
  0x22   :  { %232 = vmatpush1.bf16.msra.mxu0 %v509_v11  ;;  %498 = vmatpush1.bf16.msra.mxu1 %v509_v11 }
  0x23   :  { %233 = vmatprep.subr.bf16.mxu0 %v535_v0  ;;  %489 = vmatprep.subr.bf16.mxu1 %v535_v0 }
  0x26   :  { %234 = vmatpush1.bf16.msra.mxu0 %v213_v13  ;;  %499 = vmatpush1.bf16.msra.mxu1 %v213_v13 }
  0x29   :  { %248 = vmatmul.mubr.bf16.vlgmr.msra.gmra.mrb[0].mxu0 %v511_v14  ;;  %280 = vmatmul.mubr.bf16.vlgmr.msra.gmra.mrb[0].mxu1 %v514_v15 }
  0x2a   :  { %441 = vmatprep.mubr.msk.bf16.mxu0 %vm186_vm0, %v517_v16  ;;  %445 = vmatprep.mubr.msk.bf16.mxu1 %vm186_vm0, %v519_v17 }
  0x31   :  { %256 = vmatmul.mubr.bf16.gmra.mrb[4].mxu0 %v521_v18  ;;  %288 = vmatmul.mubr.bf16.gmra.mrb[4].mxu1 %v522_v19 }
  0x32   :  { %442 = vmatprep.mubr.msk.bf16.mxu0 %vm186_vm0, %v523_v20  ;;  %446 = vmatprep.mubr.msk.bf16.mxu1 %vm186_vm0, %v525_v21 }
  0x39   :  { %264 = vmatmul.mubr.bf16.gmra.mrb[8].mxu0 %v527_v22  ;;  %296 = vmatmul.mubr.bf16.gmra.mrb[8].mxu1 %v528_v23 }
  0x3a   :  { %443 = vmatprep.mubr.msk.bf16.mxu0 %vm186_vm0, %v529_v24  ;;  %447 = vmatprep.mubr.msk.bf16.mxu1 %vm186_vm0, %v531_v25 }
  0x41   :  { %272 = vmatmul.mubr.bf16.gmra.mrb[12].mxu0 %v533_v26  ;;  %304 = vmatmul.mubr.bf16.gmra.mrb[12].mxu1 %v534_v27 }
  0xfc   :  { %v249_v29 = vpop.f32.mrb[0].mxu0  ;;  %v281_v30 = vpop.f32.mrb[0].mxu1 }
  0xfd   :  { %v250_v31 = vadd.f32 %v645_v28, %v249_v29  ;;  %v282_v32 = vadd.f32 %v645_v28, %v281_v30  ;;  %v251_v33 = vpop.f32.mrb[1].mxu0  ;;  %v283_v34 = vpop.f32.mrb[1].mxu1 }
  0xfe   :  { %v252_v35 = vpop.f32.mrb[2].mxu0  ;;  %v284_v36 = vpop.f32.mrb[2].mxu1 }
  0xff   :  { %v312_v37 = vmax.f32 %v250_v31, 0.0  ;;  %v320_v38 = vmax.f32 %v282_v32, 0.0  ;;  %v253_v39 = vadd.f32 %v645_v28, %v252_v35  ;;  %v285_v40 = vadd.f32 %v645_v28, %v284_v36  ;;  %v254_v41 = vpop.f32.mrb[3].mxu0  ;;  %v286_v42 = vpop.f32.mrb[3].mxu1 }
 0x101   :  { %v464_v43 = vpack.c.bf16 %v312_v37, %v312_v37  ;;  %v472_v44 = vpack.c.bf16 %v320_v38, %v320_v38  ;;  %v313_v45 = vmax.f32 %v253_v39, 0.0  ;;  %v321_v46 = vmax.f32 %v285_v40, 0.0 }
 0x103   :  { %393 = vst.msk [vmem:[%s730_s3] sm:$0xf] %vm392_vm2, %v464_v43  ;;  %401 = vst.msk [vmem:[%s730_s3 + $0x20] sm:$0xf] %vm392_vm2, %v472_v44  ;;  %v465_v47 = vpack.c.bf16 %v313_v45, %v313_v45  ;;  %v473_v48 = vpack.c.bf16 %v321_v46, %v321_v46 }
 0x104   :  { %v257_v49 = vpop.f32.mrb[4].mxu0  ;;  %v289_v50 = vpop.f32.mrb[4].mxu1 }
 0x105   :  { %394 = vst.msk [vmem:[%s730_s3 + $0x4] sm:$0xf] %vm392_vm2, %v465_v47  ;;  %402 = vst.msk [vmem:[%s730_s3 + $0x24] sm:$0xf] %vm392_vm2, %v473_v48  ;;  %v258_v51 = vadd.f32 %v645_v28, %v257_v49  ;;  %v290_v52 = vadd.f32 %v645_v28, %v289_v50  ;;  %v259_v53 = vpop.f32.mrb[5].mxu0  ;;  %v291_v54 = vpop.f32.mrb[5].mxu1 }
 0x106   :  { %v260_v55 = vpop.f32.mrb[6].mxu0  ;;  %v292_v56 = vpop.f32.mrb[6].mxu1 }
 0x107   :  { %v314_v57 = vmax.f32 %v258_v51, 0.0  ;;  %v322_v58 = vmax.f32 %v290_v52, 0.0  ;;  %v261_v59 = vadd.f32 %v645_v28, %v260_v55  ;;  %v293_v60 = vadd.f32 %v645_v28, %v292_v56  ;;  %v262_v61 = vpop.f32.mrb[7].mxu0  ;;  %v294_v62 = vpop.f32.mrb[7].mxu1 }
 0x109   :  { %v466_v63 = vpack.c.bf16 %v314_v57, %v314_v57  ;;  %v474_v0 = vpack.c.bf16 %v322_v58, %v322_v58  ;;  %v315_v1 = vmax.f32 %v261_v59, 0.0  ;;  %v323_v2 = vmax.f32 %v293_v60, 0.0 }
 0x10b   :  { %395 = vst.msk [vmem:[%s730_s3 + $0x8] sm:$0xf] %vm392_vm2, %v466_v63  ;;  %403 = vst.msk [vmem:[%s730_s3 + $0x28] sm:$0xf] %vm392_vm2, %v474_v0  ;;  %v467_v3 = vpack.c.bf16 %v315_v1, %v315_v1  ;;  %v475_v4 = vpack.c.bf16 %v323_v2, %v323_v2 }
 0x10c   :  { %v265_v5 = vpop.f32.mrb[8].mxu0  ;;  %v297_v6 = vpop.f32.mrb[8].mxu1 }
 0x10d   :  { %396 = vst.msk [vmem:[%s730_s3 + $0xc] sm:$0xf] %vm392_vm2, %v467_v3  ;;  %404 = vst.msk [vmem:[%s730_s3 + $0x2c] sm:$0xf] %vm392_vm2, %v475_v4  ;;  %v266_v7 = vadd.f32 %v645_v28, %v265_v5  ;;  %v298_v8 = vadd.f32 %v645_v28, %v297_v6  ;;  %v267_v9 = vpop.f32.mrb[9].mxu0  ;;  %v299_v10 = vpop.f32.mrb[9].mxu1 }
 0x10e   :  { %v268_v11 = vpop.f32.mrb[10].mxu0  ;;  %v300_v12 = vpop.f32.mrb[10].mxu1 }
 0x10f   :  { %v316_v13 = vmax.f32 %v266_v7, 0.0  ;;  %v324_v14 = vmax.f32 %v298_v8, 0.0  ;;  %v269_v15 = vadd.f32 %v645_v28, %v268_v11  ;;  %v301_v16 = vadd.f32 %v645_v28, %v300_v12  ;;  %v270_v17 = vpop.f32.mrb[11].mxu0  ;;  %v302_v18 = vpop.f32.mrb[11].mxu1 }
 0x111   :  { %v468_v19 = vpack.c.bf16 %v316_v13, %v316_v13  ;;  %v476_v20 = vpack.c.bf16 %v324_v14, %v324_v14  ;;  %v317_v21 = vmax.f32 %v269_v15, 0.0  ;;  %v325_v22 = vmax.f32 %v301_v16, 0.0 }
 0x113   :  { %397 = vst.msk [vmem:[%s730_s3 + $0x10] sm:$0xf] %vm392_vm2, %v468_v19  ;;  %405 = vst.msk [vmem:[%s730_s3 + $0x30] sm:$0xf] %vm392_vm2, %v476_v20  ;;  %v469_v23 = vpack.c.bf16 %v317_v21, %v317_v21  ;;  %v477_v24 = vpack.c.bf16 %v325_v22, %v325_v22 }
 0x114   :  { %v273_v25 = vpop.f32.mrb[12].mxu0  ;;  %v305_v26 = vpop.f32.mrb[12].mxu1 }
 0x115   :  { %398 = vst.msk [vmem:[%s730_s3 + $0x14] sm:$0xf] %vm392_vm2, %v469_v23  ;;  %406 = vst.msk [vmem:[%s730_s3 + $0x34] sm:$0xf] %vm392_vm2, %v477_v24  ;;  %v274_v27 = vadd.f32 %v645_v28, %v273_v25  ;;  %v306_v29 = vadd.f32 %v645_v28, %v305_v26  ;;  %v275_v30 = vpop.f32.mrb[13].mxu0  ;;  %v307_v31 = vpop.f32.mrb[13].mxu1 }
 0x116   :  { %v276_v32 = vpop.f32.mrb[14].mxu0  ;;  %v308_v33 = vpop.f32.mrb[14].mxu1 }
 0x117   :  { %v318_v34 = vmax.f32 %v274_v27, 0.0  ;;  %v326_v35 = vmax.f32 %v306_v29, 0.0  ;;  %v277_v36 = vadd.f32 %v645_v28, %v276_v32  ;;  %v309_v37 = vadd.f32 %v645_v28, %v308_v33  ;;  %v278_v38 = vpop.f32.mrb[15].mxu0  ;;  %v310_v39 = vpop.f32.mrb[15].mxu1 }
 0x119   :  { %v470_v40 = vpack.c.bf16 %v318_v34, %v318_v34  ;;  %v478_v41 = vpack.c.bf16 %v326_v35, %v326_v35  ;;  %v319_v42 = vmax.f32 %v277_v36, 0.0  ;;  %v327_v43 = vmax.f32 %v309_v37, 0.0 }
 0x11b   :  { %399 = vst.msk [vmem:[%s730_s3 + $0x18] sm:$0xf] %vm392_vm2, %v470_v40  ;;  %407 = vst.msk [vmem:[%s730_s3 + $0x38] sm:$0xf] %vm392_vm2, %v478_v41  ;;  %v471_v44 = vpack.c.bf16 %v319_v42, %v319_v42  ;;  %v479_v45 = vpack.c.bf16 %v327_v43, %v327_v43 }
 0x11d   :  { %400 = vst.msk [vmem:[%s730_s3 + $0x1c] sm:$0xf] %vm392_vm2, %v471_v44  ;;  %408 = vst.msk [vmem:[%s730_s3 + $0x3c] sm:$0xf] %vm392_vm2, %v479_v45 }

// kernel: encoder_forward.3
= control target key start
LH: loop header
LB: loop body
LE: loop exit
PB: predicated region body
PF: predicated region fallthrough
CT: control target
= control target key end

     0   :  { %s485_s12 = smov 0   ;;  %s517_s0 = inlined_call_operand.vmem [shape: bf16[2,64,100], index: 0, kind: input, shape index: {}]   ;;  %s518_s1 = inlined_call_operand.vmem [shape: bf16[27,64], index: 1, kind: input, shape index: {}]   ;;  %s519_s2 = inlined_call_operand.vmem [shape: f32[3,1], index: 2, kind: input, shape index: {}]   ;;  %s520_s3 = inlined_call_operand.vmem [shape: f32[2,3,78], index: 3, kind: output, shape index: {}]  }
   0x1 LB: > { %s386_s13 = sadd.s32 4294967295, %s454_s12   ;;  %p390_p0 = scmp.ge.s32.totalorder %s454_s12, 1  ;;  %s454_s12 = sphi %s485_s12, %s13_s12  }
   0x2   : > { %p137_p1 = scmp.lt.s32.totalorder %s454_s12, 3 }
   0x4   : > { %p138_p2 = pnand %p390_p0, %p137_p1 }
   0x5   : > { %p160_p3 = scmp.lt.s32.totalorder (!%p138_p2), %s386_s13, 1  ;;  %v446_v0 = vld [vmem:[%s518_s1] sm:$0xff] (!%p138_p2)   ;;  %vm216_vm0 = vcmask (!%p138_p2), 523264   ;;  %v447_v5 = vld [vmem:[%s518_s1 + $0x8] sm:$0x3f] (!%p138_p2)   ;;  %v456_v6 = vmov (!%p138_p2), 0  }
   0x6   : > { %141 = sbr.rel (%p138_p2) target bundleno = 400 (0x190), region = 32  ;;  %419 = vmatprep.mubr.msk.bf16.mxu0 (!%p138_p2), %vm216_vm0, %v446_v0  ;;  %440 = vset.pattern.permute.xlu1 (!%p138_p2), %v456_v6  ;;  %vm279_vm1 = vcmask (!%p138_p2), 1041408   ;;  %vm298_vm2 = vcmask (!%p138_p2), 1040384   ;;  %s457_s22 = smov (!%p138_p2), 127   ;;  %v321_v20 = vld [vmem:[%s519_s2] sm:$0x7] (!%p138_p2) }
   0x7   : > { %441 = vset.pattern.permute.xlu0 (!%p138_p2), %v456_v6  ;;  %s458_s23 = smov (!%p138_p2), 118   ;;  %s459_s24 = smov (!%p138_p2), 126   ;;  %vm331_vm3 = vcmask (!%p138_p2), 632832  }
   0x8   : > { %s460_s25 = smov (!%p138_p2), 117   ;;  %s461_s28 = smov (!%p138_p2), 116  }
   0x9   : > { %s462_s29 = smov (!%p138_p2), 108   ;;  %s463_s30 = smov (!%p138_p2), 107  }
   0xa   : > { %s464_s4 = smov (!%p138_p2), 106  }
   0xd   : > { %s522_s13 = smov (!%p160_p3, %s386_s13), 1 }
   0xe   : > { %s404_s16 = sshll.u32 %s522_s13, 5  ;;  %s393_s5 = sshll.u32 %s522_s13, 2 }
   0xf   : > { %s164_s19 = scalar_lea.vmem %s517_s0, %s404_s16  ;;  %s168_s8 = scalar_lea.vmem %s520_s3, %s393_s5 }
  0x10   : > { %v442_v1 = vld [vmem:[%s164_s19] sm:$0xff]   ;;  %v443_v2 = vld [vmem:[%s164_s19 + $0x8] sm:$0xff]   ;;  %v444_v3 = vld [vmem:[%s164_s19 + $0x10] sm:$0xff]  }
  0x11   : > { %411 = vmatprep.subr.bf16.mxu0 %v442_v1  ;;  %v445_v4 = vld [vmem:[%s164_s19 + $0x18] sm:$0xff]  }
  0x12   : > { %412 = vmatpush3.bf16.msra.mxu0 %v442_v1 }
  0x13   : > { %413 = vmatprep.subr.bf16.mxu0 %v443_v2 }
  0x16   : > { %414 = vmatpush3.bf16.msra.mxu0 %v443_v2 }
  0x17   : > { %415 = vmatprep.subr.bf16.mxu0 %v444_v3 }
  0x1a   : > { %416 = vmatpush3.bf16.msra.mxu0 %v444_v3 }
  0x1b   : > { %417 = vmatprep.subr.bf16.mxu0 %v445_v4 }
  0x1e   : > { %418 = vmatpush3.bf16.msra.mxu0 %v445_v4 }
  0x21   : > { %420 = vmatmul.mubr.msk.bf16.vlgmr.msra.gmra.mrb[0].mxu0 %vm216_vm0, %v447_v5 }
  0xf4   : > { %v421_v7 = vpop.f32.mrb[0].mxu0 }
  0xf5   : > { %v257_v8 = vpop.f32.mrb[1].mxu0  ;;  %v300_v11 = vrot.slane %v421_v7, 7  ;;  %v306_v21 = vrot.slane %v421_v7, 2  ;;  %v311_v22 = vrot.slane %v421_v7, 5 }
  0xf6   : > { %v422_v9 = vpop.f32.mrb[2].mxu0  ;;  %v273_v10 = vrot.slane %v257_v8, 3  ;;  %v280_v13 = vrot.slane %v257_v8, 6 }
  0xf7   : > { %v260_v12 = vpop.f32.mrb[3].mxu0 }
  0xf8   : > { %v281_v14 = vrot.slane %v260_v12, 6  ;;  %v299_v15 = vrot.slane %v260_v12, 7  ;;  %274 = vrot.lane.b32.xlu0 %v273_v10, %s457_s22  ;;  %v287_v16 = vrot.slane %v260_v12, 1  ;;  %v292_v19 = vrot.slane %v260_v12, 4 }
  0xfa   : > { %288 = vrot.lane.b32.xlu1 %v287_v16, %s458_s23  ;;  %v282_v17 = vsel %vm279_vm1, %v280_v13, %v281_v14  ;;  %v301_v18 = vsel %vm298_vm2, %v299_v15, %v300_v11 }
  0xfc   : > { %283 = vrot.lane.b32.xlu0 %v282_v17, %s459_s24 }
  0xfe   : > { %293 = vrot.lane.b32.xlu1 %v292_v19, %s460_s25 }
 0x100   : > { %302 = vrot.lane.b32.xlu0 %v301_v18, %s461_s28 }
 0x102   : > { %324 = vperm.xlu1 %440, %v321_v20  }
 0x104   : > { %307 = vrot.lane.b32.xlu0 %v306_v21, %s462_s29 }
 0x106   : > { %312 = vrot.lane.b32.xlu1 %v311_v22, %s463_s30 }
 0x108   : > { %317 = vrot.lane.b32.xlu0 %v422_v9, %s464_s4 }
 0x16a   : > { %v275_v23 = vpop.permute.xlu0 %274 }
 0x16b   : > { %v277_v25 = vadd.f32 %v275_v23, %v257_v8 }
 0x16c   : > { %v289_v27 = vpop.permute.xlu1 %288 }
 0x16e   : > { %v284_v24 = vpop.permute.xlu0 %283 }
 0x16f   : > { %v286_v26 = vadd.f32 %v284_v24, %v277_v25 }
 0x170   : > { %v294_v29 = vpop.permute.xlu1 %293 }
 0x171   : > { %v291_v28 = vadd.f32 %v289_v27, %v286_v26 }
 0x172   : > { %v303_v30 = vpop.permute.xlu0 %302 }
 0x173   : > { %v296_v31 = vadd.f32 %v294_v29, %v291_v28 }
 0x175   : > { %v305_v32 = vadd.f32 %v303_v30, %v296_v31 }
 0x176   : > { %v308_v33 = vpop.permute.xlu0 %307 }
 0x177   : > { %v310_v35 = vadd.f32 %v308_v33, %v305_v32 }
 0x17a   : > { %v318_v38 = vpop.permute.xlu0 %317 }
 0x181   : > { %v325_v34 = vpop.permute.xlu1 %324 }
 0x185   : > { %v313_v36 = vpop.permute.xlu1 %312 }
 0x186   : > { %v315_v37 = vadd.f32 %v313_v36, %v310_v35 }
 0x188   : > { %v320_v39 = vadd.f32 %v318_v38, %v315_v37 }
 0x18a   : > { %v327_v40 = vadd.f32 %v325_v34, %v320_v39 }
 0x18c   : > { %vm328_vm4 = vcmp.gt.f32.partialorder %v327_v40, 0.0  ;;  %v329_v41 = vmul.f32 0.2, %v327_v40 }
 0x18e   : > { %v330_v42 = vsel %vm328_vm4, %v327_v40, %v329_v41 }
 0x18f   : > { %332 = vst.msk [vmem:[%s168_s8] sm:$0x7] %vm331_vm3, %v330_v42 }
 0x190 PF: > { %s13_s12 = sadd.s32 1, %s454_s12  }
 0x191   : > { %p10_p4 = scmp.ge.s32.totalorder %s13_s12, 4  }
 0x193   :  { %12 = sbr.rel (!%p10_p4) target bundleno = 1 (0x1), region = 62 }

</bundles_post_ra>
